<compile_context>
chip_gen: v7x
topology: tpu7x:2x2x1
jax: 0.10.0
libtpu: 0.0.40
codegen_flags: <defaults>
</compile_context>

<pallas_src>
import math

import jax
import jax.numpy as jnp
from jax.experimental import pallas as pl
from jax.experimental.pallas import tpu as pltpu


def _inv_standardize_q_kernel(q_ref, std_ref, o_ref):
    # o = q * std, broadcasting the (1, lanes) std row over the (tb, lanes)
    # tile. (mean - mean) is identically zero for finite params -> dropped.
    o_ref[...] = (q_ref[...] * std_ref[...]).astype(o_ref.dtype)


def _pick_tile_rows(rows, lanes, in_itemsize, out_itemsize, pipeline_budget_bytes):
    """Largest row-tile whose double-buffered input+output tiles fit the budget.

    Total pipelined footprint ~= 2*tb*lanes*in_itemsize + 2*tb*lanes*out_itemsize.
    Returns tb that is either == rows (whole array) or a multiple of 8.
    """
    per_row = 2 * lanes * (in_itemsize + out_itemsize)
    max_rows = max(1, pipeline_budget_bytes // per_row)
    if max_rows >= rows:
        return rows
    return max(8, (max_rows // 8) * 8)


def inv_standardize_q(q_standardized, mean_q, std_q, *,
                      pipeline_budget_bytes=8 << 20,
                      small_bypass_bytes=256 << 10):
    """q_standardized: (B, o_dim); mean_q/std_q: (o_dim,) float buffers.

    Returns mean_q - mean_q + q_standardized * std_q (== q * std for finite
    preprocessing params).
    """
    del mean_q  # (mean - mean) == 0 for finite params; not needed in-kernel.
    B, o_dim = q_standardized.shape
    out_dtype = q_standardized.dtype
    in_itemsize = q_standardized.dtype.itemsize
    out_itemsize = jnp.dtype(out_dtype).itemsize

    # Keep the multiply in bf16 vregs when the input is bf16 (v6e/v7x bf16
    # VALU); otherwise use f32 for the broadcast row.
    std_dtype = jnp.bfloat16 if q_standardized.dtype == jnp.bfloat16 else jnp.float32
    std_f = std_q.astype(std_dtype)

    # Small-input bypass: launch/per-step overhead dwarfs the transfer; let
    # XLA fuse the scale into the producing op instead.
    if B * o_dim * in_itemsize < small_bypass_bytes:
        return (q_standardized * std_f).astype(out_dtype)

    # Fold batch rows into the lane dimension so the last dim is a multiple of
    # 128 (lane-dense, unmasked vst). Works for any o_dim via lcm, as long as
    # B is divisible by the fold factor. o_dim=32 -> (B/4, 128).
    fold = 1
    if o_dim % 128 != 0:
        f = math.lcm(o_dim, 128) // o_dim
        if B % f == 0:
            fold = f
    rows, lanes = B // fold, o_dim * fold

    q2 = q_standardized.reshape(rows, lanes)              # metadata-only reshape
    std_row = jnp.tile(std_f, fold).reshape(1, lanes)

    tb = _pick_tile_rows(rows, lanes, in_itemsize, out_itemsize,
                         pipeline_budget_bytes)

    # v7x: keep >=2 grid steps when rows permit so the "parallel" batch axis
    # can be split across both TensorCores (otherwise one TC idles).
    if tb >= rows and rows >= 16:
        half = (rows + 1) // 2
        tb = min(rows, ((half + 7) // 8) * 8)

    grid = (pl.cdiv(rows, tb),)

    # Explicit scoped-VMEM limit covering the double-buffered in+out tiles
    # plus the (tiny) replicated std row, with slack; capped at v7x physical.
    footprint = 2 * tb * lanes * (in_itemsize + out_itemsize) + 2 * lanes * 4
    vmem_limit = min(64 << 20, max(2 * footprint + (1 << 20), 16 << 20))

    cost = pl.CostEstimate(
        flops=rows * lanes,
        transcendentals=0,
        bytes_accessed=rows * lanes * (in_itemsize + out_itemsize) + lanes * 4,
    )

    out2 = pl.pallas_call(
        _inv_standardize_q_kernel,
        out_shape=jax.ShapeDtypeStruct((rows, lanes), out_dtype),
        grid_spec=pltpu.PrefetchScalarGridSpec(
            num_scalar_prefetch=0,
            grid=grid,
            in_specs=[
                pl.BlockSpec((tb, lanes), lambda i: (i, 0)),   # q tile
                pl.BlockSpec((1, lanes), lambda i: (0, 0)),    # std (replicated)
            ],
            out_specs=pl.BlockSpec((tb, lanes), lambda i: (i, 0)),
        ),
        compiler_params=pltpu.CompilerParams(
            dimension_semantics=("parallel",),
            vmem_limit_bytes=vmem_limit,
        ),
        cost_estimate=cost,
    )(q2, std_row)

    return out2.reshape(B, o_dim)


# TODO(synk): grad_func (diag-embedded Jacobian helper) is not part of the
# forward pass and is not implemented as a kernel.


if __name__ == "__main__":
    key = jax.random.PRNGKey(0)

    # Small shapes consistent with the module: batch=16, o_dim=32.
    B, o_dim = 16, 32
    kq, _ = jax.random.split(key)
    q_standardized = jax.random.normal(kq, (B, o_dim), dtype=jnp.float32)

    # Deterministic synthetic preprocessing params (module __init__ registers
    # zero buffers of shape (o_dim,); set_params would overwrite them).
    mean_q = jnp.arange(o_dim, dtype=jnp.float32) * 0.1
    std_q = 0.5 + jnp.arange(o_dim, dtype=jnp.float32) / o_dim

    # Disable the small-input bypass so the Pallas kernel path is exercised.
    out = inv_standardize_q(q_standardized, mean_q, std_q, small_bypass_bytes=0)
    out = jax.block_until_ready(out)

    # Reference check (pure JAX, same math as the PyTorch forward).
    ref = mean_q - mean_q + q_standardized * std_q
    assert out.shape == (B, o_dim)
    assert out.dtype == q_standardized.dtype
    assert jnp.allclose(out, ref, atol=1e-6, rtol=1e-6)

    print("KERNEL_OK")
</pallas_src>

<mosaic_0001>
module attributes {stable_mosaic.version = 11 : i64} {
  func.func @_inv_standardize_q_kernel(%arg0: i32, %arg1: memref<4x128xf32, #tpu.memory_space<vmem>>, %arg2: memref<1x128xf32, #tpu.memory_space<vmem>>, %arg3: memref<4x128xf32, #tpu.memory_space<vmem>>) attributes {dimension_semantics = [#tpu.dimension_semantics<parallel>], iteration_bounds = array<i64: 1>, scalar_prefetch = 0 : i64, scratch_operands = 0 : i64, tpu.core_type = #tpu.core_type<tc>, window_params = [{transform_indices = @transform_0, window_bounds = array<i64: 4, 128>}, {pipeline_mode = #tpu.pipeline_mode<synchronous>, transform_indices = @transform_1, window_bounds = array<i64: 1, 128>}, {transform_indices = @transform_2, window_bounds = array<i64: 4, 128>}]} {
    %c0 = arith.constant 0 : index
    %c0_0 = arith.constant 0 : index
    %0 = vector.load %arg1[%c0, %c0_0] : memref<4x128xf32, #tpu.memory_space<vmem>>, vector<4x128xf32>
    %c0_1 = arith.constant 0 : index
    %c0_2 = arith.constant 0 : index
    %1 = vector.load %arg2[%c0_1, %c0_2] : memref<1x128xf32, #tpu.memory_space<vmem>>, vector<1x128xf32>
    %2 = vector.broadcast %1 : vector<1x128xf32> to vector<4x128xf32>
    %3 = arith.mulf %0, %2 : vector<4x128xf32>
    %c0_3 = arith.constant 0 : index
    %c0_4 = arith.constant 0 : index
    %4 = vector.load %arg3[%c0_3, %c0_4] : memref<4x128xf32, #tpu.memory_space<vmem>>, vector<4x128xf32>
    tpu.vector_store %arg3[%c0_3, %c0_4], %3 {strides = array<i32>} : memref<4x128xf32, #tpu.memory_space<vmem>>, vector<4x128xf32>,
    return
  }
  func.func @transform_0(%arg0: i32) -> (i32, i32) {
    %c0_i32 = arith.constant 0 : i32
    %c0_i32_0 = arith.constant 0 : i32
    return %arg0, %c0_i32 : i32, i32
  }
  func.func @transform_1(%arg0: i32) -> (i32, i32) {
    %c0_i32 = arith.constant 0 : i32
    %c0_i32_0 = arith.constant 0 : i32
    %c0_i32_1 = arith.constant 0 : i32
    return %c0_i32, %c0_i32_0 : i32, i32
  }
  func.func @transform_2(%arg0: i32) -> (i32, i32) {
    %c0_i32 = arith.constant 0 : i32
    %c0_i32_0 = arith.constant 0 : i32
    return %arg0, %c0_i32 : i32, i32
  }
}

</mosaic_0001>

<bundles_post_ra>
// kernel: tpu_custom_call.1
= control target key start
LH: loop header
LB: loop body
LE: loop exit
PB: predicated region body
PF: predicated region fallthrough
CT: control target
= control target key end

     0   :  { %7 = vsyncpa [#allocation3], 0  ;;  %s144_s0 = inlined_call_operand.hbm [shape: f32[4,128], index: 0, kind: input, shape index: {}]   ;;  %s145_s1 = inlined_call_operand.vmem [shape: f32[1,128], index: 1, kind: input, shape index: {}]   ;;  %s146_s2 = inlined_call_operand.hbm [shape: f32[4,128], index: 2, kind: output, shape index: {}]  }
   0x1   :  { %8 = vsyncpa [#allocation4], 0  ;;  %s100_s9 = smov [#allocation2]   ;;  %s52_s13 = scalar_lea.hbm %s144_s0, 64 }
   0x2   :  { %s15_s10 = sshll.u32 %s100_s9, 4  ;;  %p53_p0 = scmp.ne.s32.totalorder %s144_s0, %s52_s13  ;;  %s16_s10 = int_to_ptr.vmem [resolvable:$true] %s15_s10 }
   0x3   :  { %p56_p1 = scmp.lt.u32.totalorder %s52_s13, %s144_s0 }
   0x5   :  { %p58_p2 = pnand %p56_p1, %p53_p0 }
   0x7   :  { %61 = shalt.err (!%p58_p2)
}
   0x8   :  { %s62_s18 = scalar_lea.vmem %s16_s10, 64  ;;  %p67_p4 = scmp.lt.s32.totalorder %s16_s10, %s16_s10 }
   0x9   :  { %p63_p3 = scmp.ne.s32.totalorder %s16_s10, %s62_s18  ;;  %p68_p5 = scmp.lt.s32.totalorder %s62_s18, %s62_s18 }
   0xb   :  { %p69_p6 = por %p68_p5, %p67_p4 }
   0xd   :  { %p70_p7 = pnand %p69_p6, %p63_p3 }
   0xf   :  { %73 = shalt.err (!%p70_p7)
}
  0x10   :  { %18 = dma.hbm_to_vmem [thread:$0]  %s144_s0, 64, %s16_s10, [#allocation3]  }
  0x11   :  { %96 = dma.done.wait [#allocation3], 64  }
  0x12   :  { %97 = vsyncadd [#allocation3], 4294967232  ;;  %s101_s21 = smov [#allocation5]   ;;  %v24_v0 = vld [vmem:[#allocation2] sm:$0xf] }
  0x13   :  { %s40_s22 = sshll.u32 %s101_s21, 4  ;;  %v49_v1 = vld [vmem:[%s145_s1] ss:$0 sm:$0xff]  ;;  %s41_s22 = int_to_ptr.vmem [resolvable:$true] %s40_s22 }
  0x14   :  { %v32_v2 = vmul.f32 %v49_v1, %v24_v0  ;;  %s74_s25 = scalar_lea.vmem %s41_s22, 64  ;;  %p79_p9 = scmp.lt.s32.totalorder %s41_s22, %s41_s22 }
  0x15   :  { %p75_p8 = scmp.ne.s32.totalorder %s41_s22, %s74_s25  ;;  %p80_p10 = scmp.lt.s32.totalorder %s74_s25, %s74_s25 }
  0x16   :  { %33 = vst [vmem:[#allocation5] sm:$0xf] %v32_v2 }
  0x17   :  { %p81_p11 = por %p80_p10, %p79_p9 }
  0x19   :  { %p82_p12 = pnand %p81_p11, %p75_p8 }
  0x1b   :  { %85 = shalt.err (!%p82_p12)
}
  0x1c   :  { %s86_s27 = scalar_lea.hbm %s146_s2, 64 }
  0x1d   :  { %p87_p13 = scmp.ne.s32.totalorder %s146_s2, %s86_s27  ;;  %p90_p0 = scmp.lt.u32.totalorder %s86_s27, %s146_s2 }
  0x1f   :  { %p92_p1 = pnand %p90_p0, %p87_p13 }
  0x21   :  { %95 = shalt.err (!%p92_p1)
}
  0x22   :  { %43 = dma.vmem_to_hbm [thread:$0]  %s41_s22, 64, %s146_s2, [#allocation4]  }
  0x23   :  { %98 = dma.done.wait [#allocation4], 64  }
  0x24   :  { %99 = vsyncadd [#allocation4], 4294967232 }
  0x25   :  { %47 = vsyncpa [#allocation3], 1 }
  0x26   :  { %48 = vsyncpa [#allocation4], 1 }

</bundles_post_ra>
